<compile_context>
chip_gen: v7x
topology: tpu7x:2x2x1
jax: 0.10.0
libtpu: 0.0.40
codegen_flags: <defaults>
</compile_context>

<pallas_src>
import functools

import jax
import jax.numpy as jnp
from jax.experimental import pallas as pl
from jax.experimental.pallas import tpu as pltpu

EPS = 1e-5  # nn.BatchNorm2d default eps


def _stack_rows(x2d, H):
    """(N*H, W*C) f32 -> (N*H, 3*W*C): lane blocks [x[r-1] | x[r] | x[r+1]].

    The pad=1 halo along H is handled by a single iota row mask (zero first/last
    row of each image), which also fixes the cross-image wrap of the flattened
    (N*H) row layout.  The zero row / mask is built once per conv, not per tap;
    the kx taps + W zero-padding live in the banded weight matrix.
    """
    NH, WC = x2d.shape
    zero = jnp.zeros((1, WC), x2d.dtype)
    dn = jnp.concatenate([zero, x2d[:NH - 1]], axis=0)      # x[r-1]  (ky = 0)
    up = jnp.concatenate([x2d[1:], zero], axis=0)           # x[r+1]  (ky = 2)
    row = jax.lax.broadcasted_iota(jnp.int32, (NH, 1), 0) % H
    dn = jnp.where(row == 0, jnp.zeros_like(dn), dn)
    up = jnp.where(row == H - 1, jnp.zeros_like(up), up)
    return jnp.concatenate([dn, x2d, up], axis=1)


def _bn_scale_shift(x2d, gamma, beta, *, C, W, count):
    """Training-mode batch norm folded to a per-lane (scale, shift) pair.

    Single-pass sum / sum-of-squares; the reduction over the W lane groups of
    each channel is a shared log2(W) lane-rotate tree (s and ss stacked on
    sublanes -> half the pltpu.roll count).  Variance clamped >= 0.
    """
    s = jnp.sum(x2d, axis=0, keepdims=True)                 # (1, W*C)
    ss = jnp.sum(x2d * x2d, axis=0, keepdims=True)          # (1, W*C)
    both = jnp.concatenate([s, ss], axis=0)                 # (2, W*C)
    step = C
    while step < C * W:                                     # W is a power of two
        both = both + pltpu.roll(both, step, axis=1)
        step *= 2
    inv_n = 1.0 / count
    mean = both[0:1] * inv_n
    var = jnp.maximum(both[1:2] * inv_n - mean * mean, 0.0)
    scale = gamma * jax.lax.rsqrt(var + EPS)
    shift = beta - mean * scale
    return scale, shift


def basic_block_kernel(x_ref, m_ref, g_ref, b_ref, out_ref, o1_ref, *, C, W):
    """Two-stage grid: stage 0 = conv1+bn1+relu into VMEM scratch, stage 1 =
    conv2+bn2+residual+relu into the output.  Splitting the stages across the
    grid lets Pallas prefetch the stage-1 banded weights during stage 0."""
    stage = pl.program_id(0)
    N, H, WC = x_ref.shape
    NH = N * H
    count = N * H * W                                       # elements per channel
    x2d = x_ref[...].reshape(NH, WC)                        # f32, lane dense

    @pl.when(stage == 0)
    def _conv1_bn1_relu():
        xs = _stack_rows(x2d, H).astype(jnp.bfloat16)       # (NH, 3*WC) bf16
        o = jnp.dot(xs, m_ref[0], preferred_element_type=jnp.float32)
        scale, shift = _bn_scale_shift(o, g_ref[0], b_ref[0],
                                       C=C, W=W, count=count)
        o1_ref[...] = jnp.maximum(o * scale + shift, 0.0)   # BN affine + ReLU fused

    @pl.when(stage == 1)
    def _conv2_bn2_add_relu():
        os = _stack_rows(o1_ref[...], H).astype(jnp.bfloat16)
        o = jnp.dot(os, m_ref[0], preferred_element_type=jnp.float32)
        scale, shift = _bn_scale_shift(o, g_ref[0], b_ref[0],
                                       C=C, W=W, count=count)
        # BN2 affine + residual + ReLU in one pass (residual folded into the shift add).
        out = jnp.maximum(o * scale + (x2d + shift), 0.0)
        out_ref[...] = out.reshape(N, H, WC)


def _band_conv_weights(w_hwio, W):
    """Fold the kx taps (and W zero-padding) of a 3x3 HWIO conv weight into one
    stacked banded matrix (3*W*Cin, W*Cout); row block ky pairs with the
    dh = ky-1 row-shifted slab, so each conv is a single K=3*W*Cin matmul."""
    Cin, Cout = w_hwio.shape[2], w_hwio.shape[3]
    w_in = jnp.arange(W)[:, None]                           # (W, 1) input column
    w_out = jnp.arange(W)[None, :]                          # (1, W) output column
    kx = w_in - w_out + 1                                   # (W, W)
    valid = jnp.logical_and(kx >= 0, kx < 3)
    blocks = w_hwio[:, jnp.clip(kx, 0, 2), :, :]            # (3, W, W, Cin, Cout)
    blocks = blocks * valid[None, :, :, None, None].astype(w_hwio.dtype)
    # M[ky, w_in*Cin + ci, w_out*Cout + co] = w[ky, kx, ci, co]
    m = blocks.transpose(0, 1, 3, 2, 4).reshape(3, W * Cin, W * Cout)
    return m.reshape(3 * W * Cin, W * Cout)


@jax.jit
def basic_block_forward(x_nchw, params):
    w1, g1, b1, w2, g2, b2 = params        # w*: (3,3,Cin,Cout) HWIO; g*,b*: (1,C)
    N, C, H, W = x_nchw.shape
    Cout = w1.shape[-1]
    assert C == Cout, "downsample=None requires inplanes == planes"
    assert W & (W - 1) == 0, "W must be a power of two (lane-group tree reduce)"
    assert (W * C) % 128 == 0, "lane dim W*C must fill whole 128-lane rows"
    WC = W * C

    # NCHW -> lane-dense slab (N, H, W*C); the only wrapper-side relayout.
    x = jnp.transpose(x_nchw, (0, 2, 3, 1)).astype(jnp.float32)
    x_slab = x.reshape(N, H, WC)

    # Per-stage bf16 banded weights (2, 3*WC, WC) and f32 BN params (2, 1, WC).
    m_stk = jnp.stack([_band_conv_weights(w1.astype(jnp.float32), W),
                       _band_conv_weights(w2.astype(jnp.float32), W)],
                      axis=0).astype(jnp.bfloat16)
    tile = lambda v: jnp.tile(v.reshape(1, C).astype(jnp.float32), (1, W))
    g_stk = jnp.stack([tile(g1), tile(g2)], axis=0)
    b_stk = jnp.stack([tile(b1), tile(b2)], axis=0)

    kernel = functools.partial(basic_block_kernel, C=C, W=W)

    out_slab = pl.pallas_call(
        kernel,
        out_shape=jax.ShapeDtypeStruct((N, H, WC), jnp.float32),
        grid=(2,),                                            # stage 0: conv1, stage 1: conv2
        in_specs=[
            pl.BlockSpec((N, H, WC), lambda i: (0, 0, 0)),        # x: resident both stages
            pl.BlockSpec((1, 3 * WC, WC), lambda i: (i, 0, 0)),   # per-stage band weights
            pl.BlockSpec((1, 1, WC), lambda i: (i, 0, 0)),        # per-stage gamma
            pl.BlockSpec((1, 1, WC), lambda i: (i, 0, 0)),        # per-stage beta
        ],
        out_specs=pl.BlockSpec((N, H, WC), lambda i: (0, 0, 0)),
        scratch_shapes=[pltpu.VMEM((N * H, WC), jnp.float32)],    # o1 carried across stages
        compiler_params=pltpu.CompilerParams(
            dimension_semantics=("arbitrary",)),                  # stage 1 depends on stage 0
    )(x_slab, m_stk, g_stk, b_stk)

    out_nhwc = out_slab.reshape(N, H, W, C)
    return jnp.transpose(out_nhwc, (0, 3, 1, 2))                  # NHWC -> NCHW


def reference_forward(x_nchw, params):
    """Plain-JAX f32 reference with identical semantics, for verification."""
    w1, g1, b1, w2, g2, b2 = params
    x = jnp.transpose(x_nchw, (0, 2, 3, 1)).astype(jnp.float32)

    def conv(a, w):
        return jax.lax.conv_general_dilated(
            a, w, window_strides=(1, 1), padding=((1, 1), (1, 1)),
            dimension_numbers=("NHWC", "HWIO", "NHWC"))

    def bn(a, g, b):
        mean = jnp.mean(a, axis=(0, 1, 2), keepdims=True)
        var = jnp.mean((a - mean) ** 2, axis=(0, 1, 2), keepdims=True)
        return (a - mean) * jax.lax.rsqrt(var + EPS) * g.reshape(1, 1, 1, -1) \
            + b.reshape(1, 1, 1, -1)

    o = jnp.maximum(bn(conv(x, w1), g1, b1), 0.0)
    o = bn(conv(o, w2), g2, b2)
    o = jnp.maximum(o + x, 0.0)
    return jnp.transpose(o, (0, 3, 1, 2))


if __name__ == "__main__":
    # BasicBlock(inplanes=8, planes=8, stride=1, downsample=None)
    N, C, H, W = 2, 8, 16, 16          # W*C = 128: exactly one full lane row
    key = jax.random.PRNGKey(0)
    kx, kw1, kw2 = jax.random.split(key, 3)

    x = jax.random.normal(kx, (N, C, H, W), dtype=jnp.float32)

    fan_in = C * 3 * 3
    w1 = jax.random.normal(kw1, (3, 3, C, C), jnp.float32) * (2.0 / fan_in) ** 0.5
    w2 = jax.random.normal(kw2, (3, 3, C, C), jnp.float32) * (2.0 / fan_in) ** 0.5
    g1 = (1.0 + 0.10 * jnp.arange(C, dtype=jnp.float32)).reshape(1, C)
    b1 = (0.05 * jnp.arange(C, dtype=jnp.float32)).reshape(1, C)
    g2 = (1.0 - 0.05 * jnp.arange(C, dtype=jnp.float32)).reshape(1, C)
    b2 = (-0.02 * jnp.arange(C, dtype=jnp.float32)).reshape(1, C)
    params = (w1, g1, b1, w2, g2, b2)

    out = basic_block_forward(x, params)
    out = jax.block_until_ready(out)

    ref = reference_forward(x, params)
    assert out.shape == (N, C, H, W) and out.dtype == jnp.float32
    # Tolerance relaxed from 1e-3: MXU inputs are bf16 (two stacked 3x3 convs),
    # expected max abs error ~1e-2 against the f32 reference.
    assert jnp.allclose(out, ref, atol=5e-2, rtol=5e-2), \
        float(jnp.max(jnp.abs(out - ref)))
    print("KERNEL_OK")
</pallas_src>

<mosaic_0001>
module attributes {stable_mosaic.version = 11 : i64} {
  func.func @basic_block_kernel(%arg0: i32, %arg1: memref<2x16x128xf32, #tpu.memory_space<vmem>>, %arg2: memref<1x384x128xbf16, #tpu.memory_space<vmem>>, %arg3: memref<1x1x128xf32, #tpu.memory_space<vmem>>, %arg4: memref<1x1x128xf32, #tpu.memory_space<vmem>>, %arg5: memref<2x16x128xf32, #tpu.memory_space<vmem>>, %arg6: memref<32x128xf32, #tpu.memory_space<vmem>>) attributes {dimension_semantics = [#tpu.dimension_semantics<arbitrary>], iteration_bounds = array<i64: 2>, scalar_prefetch = 0 : i64, scratch_operands = 1 : i64, tpu.core_type = #tpu.core_type<tc>, window_params = [{pipeline_mode = #tpu.pipeline_mode<synchronous>, transform_indices = @transform_0, window_bounds = array<i64: 2, 16, 128>}, {transform_indices = @transform_1, window_bounds = array<i64: 1, 384, 128>}, {transform_indices = @transform_2, window_bounds = array<i64: 1, 1, 128>}, {transform_indices = @transform_3, window_bounds = array<i64: 1, 1, 128>}, {pipeline_mode = #tpu.pipeline_mode<synchronous>, transform_indices = @transform_4, window_bounds = array<i64: 2, 16, 128>}]} {
    %c0 = arith.constant 0 : index
    %c0_0 = arith.constant 0 : index
    %c0_1 = arith.constant 0 : index
    %0 = vector.load %arg1[%c0, %c0_0, %c0_1] : memref<2x16x128xf32, #tpu.memory_space<vmem>>, vector<2x16x128xf32>
    %1 = vector.shape_cast %0 : vector<2x16x128xf32> to vector<32x128xf32>
    %c0_i32 = arith.constant 0 : i32
    %2 = arith.cmpi eq, %arg0, %c0_i32 : i32
    %3 = arith.extui %2 : i1 to i32
    %c0_i32_2 = arith.constant 0 : i32
    %4 = arith.cmpi ne, %3, %c0_i32_2 : i32
    scf.if %4 {
      %cst = arith.constant 0.000000e+00 : f32
      %8 = vector.broadcast %cst : f32 to vector<1x128xf32>
      %9 = vector.extract_strided_slice %1 {offsets = [0, 0], sizes = [31, 128], strides = [1, 1]} : vector<32x128xf32> to vector<31x128xf32>
      %10 = tpu.concatenate %8, %9 in 0 : vector<1x128xf32>, vector<31x128xf32> -> vector<32x128xf32>
      %11 = vector.extract_strided_slice %1 {offsets = [1, 0], sizes = [31, 128], strides = [1, 1]} : vector<32x128xf32> to vector<31x128xf32>
      %12 = tpu.concatenate %11, %8 in 0 : vector<31x128xf32>, vector<1x128xf32> -> vector<32x128xf32>
      %13 = tpu.iota {dimensions = array<i32: 0>} : vector<32x1xi32>
      %c16_i32 = arith.constant 16 : i32
      %c0_i32_4 = arith.constant 0 : i32
      %14 = arith.cmpi eq, %c16_i32, %c0_i32_4 : i32
      %c1_i32_5 = arith.constant 1 : i32
      %15 = arith.select %14, %c1_i32_5, %c16_i32 : i32
      %16 = vector.broadcast %15 : i32 to vector<32x1xi32>
      %17 = arith.remsi %13, %16 : vector<32x1xi32>
      %c0_i32_6 = arith.constant 0 : i32
      %18 = vector.broadcast %c0_i32_6 : i32 to vector<32x1xi32>
      %19 = arith.cmpi ne, %17, %18 : vector<32x1xi32>
      %c0_i32_7 = arith.constant 0 : i32
      %20 = vector.broadcast %c0_i32_7 : i32 to vector<32x1xi32>
      %21 = arith.cmpi slt, %17, %20 : vector<32x1xi32>
      %c0_i32_8 = arith.constant 0 : i32
      %22 = arith.cmpi slt, %15, %c0_i32_8 : i32
      %23 = vector.broadcast %22 : i1 to vector<32x1xi1>
      %24 = vector.broadcast %23 : vector<32x1xi1> to vector<32x1xi1>
      %25 = arith.xori %21, %24 : vector<32x1xi1>
      %26 = arith.andi %25, %19 : vector<32x1xi1>
      %27 = vector.broadcast %15 : i32 to vector<32x1xi32>
      %28 = arith.addi %17, %27 : vector<32x1xi32>
      %29 = arith.select %26, %28, %17 : vector<32x1xi1>, vector<32x1xi32>
      %c0_i32_9 = arith.constant 0 : i32
      %30 = vector.broadcast %c0_i32_9 : i32 to vector<32x1xi32>
      %31 = arith.cmpi eq, %29, %30 : vector<32x1xi32>
      %cst_10 = arith.constant 0.000000e+00 : f32
      %32 = vector.broadcast %cst_10 : f32 to vector<32x128xf32>
      %33 = vector.shape_cast %31 : vector<32x1xi1> to vector<32x1xi1>
      %34 = vector.broadcast %33 : vector<32x1xi1> to vector<32x128xi1>
      %35 = arith.select %34, %32, %10 : vector<32x128xi1>, vector<32x128xf32>
      %c15_i32 = arith.constant 15 : i32
      %36 = vector.broadcast %c15_i32 : i32 to vector<32x1xi32>
      %37 = arith.cmpi eq, %29, %36 : vector<32x1xi32>
      %cst_11 = arith.constant 0.000000e+00 : f32
      %38 = vector.broadcast %cst_11 : f32 to vector<32x128xf32>
      %39 = vector.shape_cast %37 : vector<32x1xi1> to vector<32x1xi1>
      %40 = vector.broadcast %39 : vector<32x1xi1> to vector<32x128xi1>
      %41 = arith.select %40, %38, %12 : vector<32x128xi1>, vector<32x128xf32>
      %42 = tpu.concatenate %35, %1, %41 in 1 : vector<32x128xf32>, vector<32x128xf32>, vector<32x128xf32> -> vector<32x384xf32>
      %43 = arith.truncf %42 : vector<32x384xf32> to vector<32x384xbf16>
      %c0_12 = arith.constant 0 : index
      %c0_13 = arith.constant 0 : index
      %c0_14 = arith.constant 0 : index
      %44 = vector.load %arg2[%c0_12, %c0_13, %c0_14] : memref<1x384x128xbf16, #tpu.memory_space<vmem>>, vector<1x384x128xbf16>
      %45 = vector.shape_cast %44 : vector<1x384x128xbf16> to vector<384x128xbf16>
      %cst_15 = arith.constant dense<0.000000e+00> : vector<32x128xf32>
      %46 = tpu.matmul %43, %45, %cst_15 {dimension_numbers = #tpu.dot_dimension_numbers<[1], [0], [0], [1], [0, 0, 1, 1], [], []>} : vector<32x384xbf16>, vector<384x128xbf16>, vector<32x128xf32> -> vector<32x128xf32>
      %c0_16 = arith.constant 0 : index
      %c0_17 = arith.constant 0 : index
      %c0_18 = arith.constant 0 : index
      %47 = vector.load %arg3[%c0_16, %c0_17, %c0_18] : memref<1x1x128xf32, #tpu.memory_space<vmem>>, vector<1x1x128xf32>
      %48 = vector.shape_cast %47 : vector<1x1x128xf32> to vector<1x128xf32>
      %c0_19 = arith.constant 0 : index
      %c0_20 = arith.constant 0 : index
      %c0_21 = arith.constant 0 : index
      %49 = vector.load %arg4[%c0_19, %c0_20, %c0_21] : memref<1x1x128xf32, #tpu.memory_space<vmem>>, vector<1x1x128xf32>
      %50 = vector.shape_cast %49 : vector<1x1x128xf32> to vector<1x128xf32>
      %cst_22 = arith.constant dense<0.000000e+00> : vector<128xf32>
      %51 = vector.multi_reduction <add>, %46, %cst_22 [0] : vector<32x128xf32> to vector<128xf32>
      %52 = vector.shape_cast %51 : vector<128xf32> to vector<1x128xf32>
      %53 = arith.mulf %46, %46 : vector<32x128xf32>
      %cst_23 = arith.constant dense<0.000000e+00> : vector<128xf32>
      %54 = vector.multi_reduction <add>, %53, %cst_23 [0] : vector<32x128xf32> to vector<128xf32>
      %55 = vector.shape_cast %54 : vector<128xf32> to vector<1x128xf32>
      %56 = tpu.concatenate %52, %55 in 0 : vector<1x128xf32>, vector<1x128xf32> -> vector<2x128xf32>
      %c8_i32 = arith.constant 8 : i32
      %57 = tpu.dynamic_rotate %56 by %c8_i32 dim 1 : vector<2x128xf32>, i32 -> vector<2x128xf32>
      %58 = arith.addf %56, %57 : vector<2x128xf32>
      %c16_i32_24 = arith.constant 16 : i32
      %59 = tpu.dynamic_rotate %58 by %c16_i32_24 dim 1 : vector<2x128xf32>, i32 -> vector<2x128xf32>
      %60 = arith.addf %58, %59 : vector<2x128xf32>
      %c32_i32 = arith.constant 32 : i32
      %61 = tpu.dynamic_rotate %60 by %c32_i32 dim 1 : vector<2x128xf32>, i32 -> vector<2x128xf32>
      %62 = arith.addf %60, %61 : vector<2x128xf32>
      %c64_i32 = arith.constant 64 : i32
      %63 = tpu.dynamic_rotate %62 by %c64_i32 dim 1 : vector<2x128xf32>, i32 -> vector<2x128xf32>
      %64 = arith.addf %62, %63 : vector<2x128xf32>
      %65 = vector.extract_strided_slice %64 {offsets = [0, 0], sizes = [1, 128], strides = [1, 1]} : vector<2x128xf32> to vector<1x128xf32>
      %cst_25 = arith.constant 0.001953125 : f32
      %66 = vector.broadcast %cst_25 : f32 to vector<1x128xf32>
      %67 = arith.mulf %65, %66 : vector<1x128xf32>
      %68 = vector.extract_strided_slice %64 {offsets = [1, 0], sizes = [1, 128], strides = [1, 1]} : vector<2x128xf32> to vector<1x128xf32>
      %cst_26 = arith.constant 0.001953125 : f32
      %69 = vector.broadcast %cst_26 : f32 to vector<1x128xf32>
      %70 = arith.mulf %68, %69 : vector<1x128xf32>
      %71 = arith.mulf %67, %67 : vector<1x128xf32>
      %72 = arith.subf %70, %71 : vector<1x128xf32>
      %cst_27 = arith.constant 0.000000e+00 : f32
      %73 = vector.broadcast %cst_27 : f32 to vector<1x128xf32>
      %74 = arith.maximumf %72, %73 : vector<1x128xf32>
      %cst_28 = arith.constant 9.99999974E-6 : f32
      %75 = vector.broadcast %cst_28 : f32 to vector<1x128xf32>
      %76 = arith.addf %74, %75 : vector<1x128xf32>
      %77 = math.rsqrt %76 : vector<1x128xf32>
      %78 = arith.mulf %48, %77 : vector<1x128xf32>
      %79 = arith.mulf %67, %78 : vector<1x128xf32>
      %80 = arith.subf %50, %79 : vector<1x128xf32>
      %81 = vector.broadcast %78 : vector<1x128xf32> to vector<32x128xf32>
      %82 = arith.mulf %46, %81 : vector<32x128xf32>
      %83 = vector.broadcast %80 : vector<1x128xf32> to vector<32x128xf32>
      %84 = arith.addf %82, %83 : vector<32x128xf32>
      %cst_29 = arith.constant 0.000000e+00 : f32
      %85 = vector.broadcast %cst_29 : f32 to vector<32x128xf32>
      %86 = arith.maximumf %84, %85 : vector<32x128xf32>
      %c0_30 = arith.constant 0 : index
      %c0_31 = arith.constant 0 : index
      %87 = vector.load %arg6[%c0_30, %c0_31] : memref<32x128xf32, #tpu.memory_space<vmem>>, vector<32x128xf32>
      tpu.vector_store %arg6[%c0_30, %c0_31], %86 {strides = array<i32>} : memref<32x128xf32, #tpu.memory_space<vmem>>, vector<32x128xf32>,
    } else {
    }
    %c1_i32 = arith.constant 1 : i32
    %5 = arith.cmpi eq, %arg0, %c1_i32 : i32
    %6 = arith.extui %5 : i1 to i32
    %c0_i32_3 = arith.constant 0 : i32
    %7 = arith.cmpi ne, %6, %c0_i32_3 : i32
    scf.if %7 {
      %c0_4 = arith.constant 0 : index
      %c0_5 = arith.constant 0 : index
      %8 = vector.load %arg6[%c0_4, %c0_5] : memref<32x128xf32, #tpu.memory_space<vmem>>, vector<32x128xf32>
      %cst = arith.constant 0.000000e+00 : f32
      %9 = vector.broadcast %cst : f32 to vector<1x128xf32>
      %10 = vector.extract_strided_slice %8 {offsets = [0, 0], sizes = [31, 128], strides = [1, 1]} : vector<32x128xf32> to vector<31x128xf32>
      %11 = tpu.concatenate %9, %10 in 0 : vector<1x128xf32>, vector<31x128xf32> -> vector<32x128xf32>
      %12 = vector.extract_strided_slice %8 {offsets = [1, 0], sizes = [31, 128], strides = [1, 1]} : vector<32x128xf32> to vector<31x128xf32>
      %13 = tpu.concatenate %12, %9 in 0 : vector<31x128xf32>, vector<1x128xf32> -> vector<32x128xf32>
      %14 = tpu.iota {dimensions = array<i32: 0>} : vector<32x1xi32>
      %c16_i32 = arith.constant 16 : i32
      %c0_i32_6 = arith.constant 0 : i32
      %15 = arith.cmpi eq, %c16_i32, %c0_i32_6 : i32
      %c1_i32_7 = arith.constant 1 : i32
      %16 = arith.select %15, %c1_i32_7, %c16_i32 : i32
      %17 = vector.broadcast %16 : i32 to vector<32x1xi32>
      %18 = arith.remsi %14, %17 : vector<32x1xi32>
      %c0_i32_8 = arith.constant 0 : i32
      %19 = vector.broadcast %c0_i32_8 : i32 to vector<32x1xi32>
      %20 = arith.cmpi ne, %18, %19 : vector<32x1xi32>
      %c0_i32_9 = arith.constant 0 : i32
      %21 = vector.broadcast %c0_i32_9 : i32 to vector<32x1xi32>
      %22 = arith.cmpi slt, %18, %21 : vector<32x1xi32>
      %c0_i32_10 = arith.constant 0 : i32
      %23 = arith.cmpi slt, %16, %c0_i32_10 : i32
      %24 = vector.broadcast %23 : i1 to vector<32x1xi1>
      %25 = vector.broadcast %24 : vector<32x1xi1> to vector<32x1xi1>
      %26 = arith.xori %22, %25 : vector<32x1xi1>
      %27 = arith.andi %26, %20 : vector<32x1xi1>
      %28 = vector.broadcast %16 : i32 to vector<32x1xi32>
      %29 = arith.addi %18, %28 : vector<32x1xi32>
      %30 = arith.select %27, %29, %18 : vector<32x1xi1>, vector<32x1xi32>
      %c0_i32_11 = arith.constant 0 : i32
      %31 = vector.broadcast %c0_i32_11 : i32 to vector<32x1xi32>
      %32 = arith.cmpi eq, %30, %31 : vector<32x1xi32>
      %cst_12 = arith.constant 0.000000e+00 : f32
      %33 = vector.broadcast %cst_12 : f32 to vector<32x128xf32>
      %34 = vector.shape_cast %32 : vector<32x1xi1> to vector<32x1xi1>
      %35 = vector.broadcast %34 : vector<32x1xi1> to vector<32x128xi1>
      %36 = arith.select %35, %33, %11 : vector<32x128xi1>, vector<32x128xf32>
      %c15_i32 = arith.constant 15 : i32
      %37 = vector.broadcast %c15_i32 : i32 to vector<32x1xi32>
      %38 = arith.cmpi eq, %30, %37 : vector<32x1xi32>
      %cst_13 = arith.constant 0.000000e+00 : f32
      %39 = vector.broadcast %cst_13 : f32 to vector<32x128xf32>
      %40 = vector.shape_cast %38 : vector<32x1xi1> to vector<32x1xi1>
      %41 = vector.broadcast %40 : vector<32x1xi1> to vector<32x128xi1>
      %42 = arith.select %41, %39, %13 : vector<32x128xi1>, vector<32x128xf32>
      %43 = tpu.concatenate %36, %8, %42 in 1 : vector<32x128xf32>, vector<32x128xf32>, vector<32x128xf32> -> vector<32x384xf32>
      %44 = arith.truncf %43 : vector<32x384xf32> to vector<32x384xbf16>
      %c0_14 = arith.constant 0 : index
      %c0_15 = arith.constant 0 : index
      %c0_16 = arith.constant 0 : index
      %45 = vector.load %arg2[%c0_14, %c0_15, %c0_16] : memref<1x384x128xbf16, #tpu.memory_space<vmem>>, vector<1x384x128xbf16>
      %46 = vector.shape_cast %45 : vector<1x384x128xbf16> to vector<384x128xbf16>
      %cst_17 = arith.constant dense<0.000000e+00> : vector<32x128xf32>
      %47 = tpu.matmul %44, %46, %cst_17 {dimension_numbers = #tpu.dot_dimension_numbers<[1], [0], [0], [1], [0, 0, 1, 1], [], []>} : vector<32x384xbf16>, vector<384x128xbf16>, vector<32x128xf32> -> vector<32x128xf32>
      %c0_18 = arith.constant 0 : index
      %c0_19 = arith.constant 0 : index
      %c0_20 = arith.constant 0 : index
      %48 = vector.load %arg3[%c0_18, %c0_19, %c0_20] : memref<1x1x128xf32, #tpu.memory_space<vmem>>, vector<1x1x128xf32>
      %49 = vector.shape_cast %48 : vector<1x1x128xf32> to vector<1x128xf32>
      %c0_21 = arith.constant 0 : index
      %c0_22 = arith.constant 0 : index
      %c0_23 = arith.constant 0 : index
      %50 = vector.load %arg4[%c0_21, %c0_22, %c0_23] : memref<1x1x128xf32, #tpu.memory_space<vmem>>, vector<1x1x128xf32>
      %51 = vector.shape_cast %50 : vector<1x1x128xf32> to vector<1x128xf32>
      %cst_24 = arith.constant dense<0.000000e+00> : vector<128xf32>
      %52 = vector.multi_reduction <add>, %47, %cst_24 [0] : vector<32x128xf32> to vector<128xf32>
      %53 = vector.shape_cast %52 : vector<128xf32> to vector<1x128xf32>
      %54 = arith.mulf %47, %47 : vector<32x128xf32>
      %cst_25 = arith.constant dense<0.000000e+00> : vector<128xf32>
      %55 = vector.multi_reduction <add>, %54, %cst_25 [0] : vector<32x128xf32> to vector<128xf32>
      %56 = vector.shape_cast %55 : vector<128xf32> to vector<1x128xf32>
      %57 = tpu.concatenate %53, %56 in 0 : vector<1x128xf32>, vector<1x128xf32> -> vector<2x128xf32>
      %c8_i32 = arith.constant 8 : i32
      %58 = tpu.dynamic_rotate %57 by %c8_i32 dim 1 : vector<2x128xf32>, i32 -> vector<2x128xf32>
      %59 = arith.addf %57, %58 : vector<2x128xf32>
      %c16_i32_26 = arith.constant 16 : i32
      %60 = tpu.dynamic_rotate %59 by %c16_i32_26 dim 1 : vector<2x128xf32>, i32 -> vector<2x128xf32>
      %61 = arith.addf %59, %60 : vector<2x128xf32>
      %c32_i32 = arith.constant 32 : i32
      %62 = tpu.dynamic_rotate %61 by %c32_i32 dim 1 : vector<2x128xf32>, i32 -> vector<2x128xf32>
      %63 = arith.addf %61, %62 : vector<2x128xf32>
      %c64_i32 = arith.constant 64 : i32
      %64 = tpu.dynamic_rotate %63 by %c64_i32 dim 1 : vector<2x128xf32>, i32 -> vector<2x128xf32>
      %65 = arith.addf %63, %64 : vector<2x128xf32>
      %66 = vector.extract_strided_slice %65 {offsets = [0, 0], sizes = [1, 128], strides = [1, 1]} : vector<2x128xf32> to vector<1x128xf32>
      %cst_27 = arith.constant 0.001953125 : f32
      %67 = vector.broadcast %cst_27 : f32 to vector<1x128xf32>
      %68 = arith.mulf %66, %67 : vector<1x128xf32>
      %69 = vector.extract_strided_slice %65 {offsets = [1, 0], sizes = [1, 128], strides = [1, 1]} : vector<2x128xf32> to vector<1x128xf32>
      %cst_28 = arith.constant 0.001953125 : f32
      %70 = vector.broadcast %cst_28 : f32 to vector<1x128xf32>
      %71 = arith.mulf %69, %70 : vector<1x128xf32>
      %72 = arith.mulf %68, %68 : vector<1x128xf32>
      %73 = arith.subf %71, %72 : vector<1x128xf32>
      %cst_29 = arith.constant 0.000000e+00 : f32
      %74 = vector.broadcast %cst_29 : f32 to vector<1x128xf32>
      %75 = arith.maximumf %73, %74 : vector<1x128xf32>
      %cst_30 = arith.constant 9.99999974E-6 : f32
      %76 = vector.broadcast %cst_30 : f32 to vector<1x128xf32>
      %77 = arith.addf %75, %76 : vector<1x128xf32>
      %78 = math.rsqrt %77 : vector<1x128xf32>
      %79 = arith.mulf %49, %78 : vector<1x128xf32>
      %80 = arith.mulf %68, %79 : vector<1x128xf32>
      %81 = arith.subf %51, %80 : vector<1x128xf32>
      %82 = vector.broadcast %79 : vector<1x128xf32> to vector<32x128xf32>
      %83 = arith.mulf %47, %82 : vector<32x128xf32>
      %84 = vector.broadcast %81 : vector<1x128xf32> to vector<32x128xf32>
      %85 = arith.addf %1, %84 : vector<32x128xf32>
      %86 = arith.addf %83, %85 : vector<32x128xf32>
      %cst_31 = arith.constant 0.000000e+00 : f32
      %87 = vector.broadcast %cst_31 : f32 to vector<32x128xf32>
      %88 = arith.maximumf %86, %87 : vector<32x128xf32>
      %89 = vector.shape_cast %88 : vector<32x128xf32> to vector<2x16x128xf32>
      %c0_32 = arith.constant 0 : index
      %c0_33 = arith.constant 0 : index
      %c0_34 = arith.constant 0 : index
      %90 = vector.load %arg5[%c0_32, %c0_33, %c0_34] : memref<2x16x128xf32, #tpu.memory_space<vmem>>, vector<2x16x128xf32>
      tpu.vector_store %arg5[%c0_32, %c0_33, %c0_34], %89 {strides = array<i32>} : memref<2x16x128xf32, #tpu.memory_space<vmem>>, vector<2x16x128xf32>,
    } else {
    }
    return
  }
  func.func @transform_0(%arg0: i32) -> (i32, i32, i32) {
    %c0_i32 = arith.constant 0 : i32
    %c0_i32_0 = arith.constant 0 : i32
    %c0_i32_1 = arith.constant 0 : i32
    %c0_i32_2 = arith.constant 0 : i32
    return %c0_i32, %c0_i32_0, %c0_i32_1 : i32, i32, i32
  }
  func.func @transform_1(%arg0: i32) -> (i32, i32, i32) {
    %c0_i32 = arith.constant 0 : i32
    %c0_i32_0 = arith.constant 0 : i32
    %c0_i32_1 = arith.constant 0 : i32
    return %arg0, %c0_i32, %c0_i32_0 : i32, i32, i32
  }
  func.func @transform_2(%arg0: i32) -> (i32, i32, i32) {
    %c0_i32 = arith.constant 0 : i32
    %c0_i32_0 = arith.constant 0 : i32
    %c0_i32_1 = arith.constant 0 : i32
    return %arg0, %c0_i32, %c0_i32_0 : i32, i32, i32
  }
  func.func @transform_3(%arg0: i32) -> (i32, i32, i32) {
    %c0_i32 = arith.constant 0 : i32
    %c0_i32_0 = arith.constant 0 : i32
    %c0_i32_1 = arith.constant 0 : i32
    return %arg0, %c0_i32, %c0_i32_0 : i32, i32, i32
  }
  func.func @transform_4(%arg0: i32) -> (i32, i32, i32) {
    %c0_i32 = arith.constant 0 : i32
    %c0_i32_0 = arith.constant 0 : i32
    %c0_i32_1 = arith.constant 0 : i32
    %c0_i32_2 = arith.constant 0 : i32
    return %c0_i32, %c0_i32_0, %c0_i32_1 : i32, i32, i32
  }
}

</mosaic_0001>

<bundles_post_ra>
// kernel: basic_block_forward.1
= control target key start
LH: loop header
LB: loop body
LE: loop exit
PB: predicated region body
PF: predicated region fallthrough
CT: control target
= control target key end

     0   :  { %s1619_s15 = smov 0   ;;  %s1835_s0 = inlined_call_operand.vmem [shape: f32[2,16,128], index: 0, kind: input, shape index: {}]   ;;  %s1836_s1 = inlined_call_operand.vmem [shape: bf16[2,384,128], index: 1, kind: input, shape index: {}]   ;;  %s1837_s2 = inlined_call_operand.vmem [shape: f32[2,1,128], index: 2, kind: input, shape index: {}]   ;;  %s1838_s3 = inlined_call_operand.vmem [shape: f32[2,1,128], index: 3, kind: input, shape index: {}]   ;;  %s1839_s4 = inlined_call_operand.vmem [shape: f32[2,16,128], index: 4, kind: output, shape index: {}]  }
   0x1 LB: > { %s1625_s16 = sadd.s32 4294967295, %s1580_s15   ;;  %p1291_p0 = scmp.ge.s32.totalorder %s1580_s15, 1  ;;  %s1580_s15 = sphi %s1619_s15, %s14_s15  }
   0x2   : > { %p173_p1 = scmp.lt.s32.totalorder %s1580_s15, 3 }
   0x4   : > { %p174_p2 = pnand %p1291_p0, %p173_p1 }
   0x5   : > { %p200_p3 = scmp.lt.s32.totalorder (!%p174_p2), %s1625_s16, 1  ;;  %v1633_v0 = vld [vmem:[%s1835_s0] sm:$0xff] (!%p174_p2)  ;;  %v1638_v1 = vld [vmem:[%s1835_s0 + $0x8] sm:$0xff] (!%p174_p2)  ;;  %v1643_v2 = vld [vmem:[%s1835_s0 + $0x10] sm:$0xff] (!%p174_p2)  ;;  %p1293_p4 = scmp.ne.s32.totalorder (!%p174_p2), %s1625_s16, 0 }
   0x6   : > { %177 = sbr.rel (%p174_p2) target bundleno = 1597 (0x63d), region = 36  ;;  %v1648_v3 = vld [vmem:[%s1835_s0 + $0x18] sm:$0xff] (!%p174_p2) }
   0xd   : > { %s201_s25 = scalar_select %p200_p3, %s1625_s16, 1 }
   0xe   : > { %219 = sbr.rel (%p1293_p4) target bundleno = 806 (0x326), region = 40  ;;  %v336_v5 = vpack.c.bf16 (!%p1293_p4), %v1638_v1, %v1633_v0  ;;  %v250_v11 = vlaneseq (!%p1293_p4)  ;;  %v238_v20 = vrot.slane (!%p1293_p4), %v1633_v0, 1  ;;  %v239_v23 = vrot.slane (!%p1293_p4), %v1638_v1, 1  ;;  %s1583_s10 = smov (!%p1293_p4), 8  }
   0xf   : > { %s1501_s26 = smul.u32 192, %s201_s25  ;;  %s1654_s29 = scalar_lea.vmem %s1837_s2, %s201_s25  ;;  %v241_v25 = vrot.slane (!%p1293_p4), %v1643_v2, 1  ;;  %vm237_vm0 = vcmask (!%p1293_p4), 1046528   ;;  %v225_v33 = vrot.slane (!%p1293_p4), %v1633_v0, 7  ;;  %v226_v38 = vrot.slane (!%p1293_p4), %v1638_v1, 7 }
  0x10   : > { %s1659_s6 = scalar_lea.vmem %s1838_s3, %s201_s25  ;;  %565 = vmatprep.mubr.bf16.mxu0 (!%p1293_p4), %v336_v5  ;;  %v1679_v16 = vshrl.u32 (!%p1293_p4), %v250_v11, 7  ;;  %v240_v30 = vsel (!%p1293_p4), %vm237_vm0, %v238_v20, %v239_v23  ;;  %vm224_vm2 = vcmask (!%p1293_p4), 1040384   ;;  %vm1582_vm3 = vmmov (!%p1293_p4), 1   ;;  %s1584_s11 = smov (!%p1293_p4), 16  }
  0x11   : > { %s1664_s9 = scalar_lea.vmem %s1836_s1, %s1501_s26  ;;  %v242_v31 = vsel (!%p1293_p4), %vm237_vm0, %v239_v23, %v241_v25  ;;  %v243_v41 = vrot.slane (!%p1293_p4), %v1648_v3, 1  ;;  %v227_v45 = vsel (!%p1293_p4), %vm224_vm2, %v225_v33, %v226_v38  ;;  %v236_v46 = vsel (!%p1293_p4), %vm224_vm2, 0.0, %v225_v33  ;;  %s1585_s12 = smov (!%p1293_p4), 32  }
  0x12   : > { %v1522_v4 = vld [vmem:[%s1664_s9 + $0x40] sm:$0xff] (!%p1293_p4)   ;;  %v1525_v8 = vld [vmem:[%s1664_s9 + $0x48] sm:$0xff] (!%p1293_p4)   ;;  %v1528_v12 = vld [vmem:[%s1664_s9 + $0x50] sm:$0xff] (!%p1293_p4)   ;;  %v252_v21 = vadd.s32 (!%p1293_p4), 8, %v1679_v16  ;;  %v1328_v35 = vpack.c.bf16 (!%p1293_p4), %v242_v31, %v240_v30  ;;  %v254_v36 = vadd.s32 (!%p1293_p4), 24, %v1679_v16  ;;  %v259_v40 = vand.u32 (!%p1293_p4), 15, %v1679_v16 }
  0x13   : > { %v1523_v6 = vld [vmem:[%s1664_s9] sm:$0xff] (!%p1293_p4)   ;;  %1385 = vmatprep.subr.bf16.mxu0 (!%p1293_p4), %v1522_v4  ;;  %v1526_v9 = vld [vmem:[%s1664_s9 + $0x8] sm:$0xff] (!%p1293_p4)   ;;  %v1529_v13 = vld [vmem:[%s1664_s9 + $0x10] sm:$0xff] (!%p1293_p4)   ;;  %v253_v47 = vadd.s32 (!%p1293_p4), 16, %v1679_v16  ;;  %v244_v48 = vsel (!%p1293_p4), %vm237_vm0, %v241_v25, %v243_v41  ;;  %v249_v49 = vsel (!%p1293_p4), %vm237_vm0, %v243_v41, 0.0  ;;  %v1320_v50 = vpack.c.bf16 (!%p1293_p4), %v227_v45, %v236_v46  ;;  %s1586_s13 = smov (!%p1293_p4), 64  }
  0x14   : > { %v1524_v7 = vld [vmem:[%s1664_s9 + $0x80] sm:$0xff] (!%p1293_p4)   ;;  %1386 = vmatpush3.bf16.msra.mxu0 (!%p1293_p4), %v1523_v6  ;;  %v1527_v10 = vld [vmem:[%s1664_s9 + $0x88] sm:$0xff] (!%p1293_p4)   ;;  %v1530_v14 = vld [vmem:[%s1664_s9 + $0x90] sm:$0xff] (!%p1293_p4)   ;;  %v266_v27 = vand.u32 (!%p1293_p4), 15, %v252_v21  ;;  %v280_v43 = vand.u32 (!%p1293_p4), 15, %v254_v36  ;;  %vm1377_vm5 = vcmp.ne.s32.totalorder (!%p1293_p4), %v259_v40, 0  ;;  %v339_v51 = vpack.c.bf16 (!%p1293_p4), %v1648_v3, %v1643_v2 }
  0x15   : > { %1461 = vmatprep.subr.bf16.mxu1 %v1524_v7  ;;  %1387 = vmatprep.subr.bf16.mxu0 %v1525_v8  ;;  %v1531_v15 = vld [vmem:[%s1664_s9 + $0x58] sm:$0xff]   ;;  %v1534_v19 = vld [vmem:[%s1664_s9 + $0x60] sm:$0xff]   ;;  %v1537_v26 = vld [vmem:[%s1664_s9 + $0x68] sm:$0xff]   ;;  %v228_v52 = vrot.slane %v1643_v2, 7  ;;  %v230_v53 = vrot.slane %v1648_v3, 7  ;;  %v1332_v54 = vpack.c.bf16 %v249_v49, %v244_v48  ;;  %v273_v55 = vand.u32 15, %v253_v47 }
  0x16   : > { %1462 = vmatpush3.bf16.msra.mxu1 %v1524_v7  ;;  %v1532_v17 = vld [vmem:[%s1664_s9 + $0x18] sm:$0xff]   ;;  %v1536_v22 = vld [vmem:[%s1664_s9 + $0xa0] sm:$0xff]   ;;  %v1539_v28 = vld [vmem:[%s1664_s9 + $0xa8] sm:$0xff]   ;;  %vm1379_vm1 = vcmp.ne.s32.totalorder %v266_v27, 15  ;;  %vm1380_vm6 = vcmp.ne.s32.totalorder %v280_v43, 15 }
  0x17   : > { %1463 = vmatprep.subr.bf16.mxu1 %v1527_v10  ;;  %v1533_v18 = vld [vmem:[%s1664_s9 + $0x98] sm:$0xff]   ;;  %v1535_v24 = vld [vmem:[%s1664_s9 + $0x20] sm:$0xff]   ;;  %v1538_v29 = vld [vmem:[%s1664_s9 + $0x28] sm:$0xff]   ;;  %v229_v56 = vsel %vm224_vm2, %v226_v38, %v228_v52  ;;  %v231_v57 = vsel %vm224_vm2, %v228_v52, %v230_v53  ;;  %vm1378_vm9 = vcmp.ne.s32.totalorder %v273_v55, 0 }
  0x18   : > { %1388 = vmatpush3.bf16.msra.mxu0 %v1526_v9  ;;  %v1540_v32 = vld [vmem:[%s1664_s9 + $0x70] sm:$0xff]   ;;  %v1543_v39 = vld [vmem:[%s1664_s9 + $0x78] sm:$0xff]   ;;  %vm1327_vm4 = vmpackc.low %vm1379_vm1, %vm1582_vm3  ;;  %v1324_v58 = vpack.c.bf16 %v231_v57, %v229_v56  ;;  %v1587_v57 = vmov 1966171168  }
  0x19   : > { %1389 = vmatprep.subr.bf16.mxu0 %v1528_v12  ;;  %v1542_v34 = vld [vmem:[%s1664_s9 + $0xb0] sm:$0xff]   ;;  %v1545_v42 = vld [vmem:[%s1664_s9 + $0xb8] sm:$0xff]   ;;  %1477 = vmatprep.mubr.msk.bf16.mxu1 %vm1327_vm4, %v1328_v35  ;;  %vm1319_vm7 = vmpackc.low %vm1582_vm3, %vm1377_vm5 }
  0x1a   : > { %1464 = vmatpush3.bf16.msra.mxu1 %v1527_v10  ;;  %v1541_v37 = vld [vmem:[%s1664_s9 + $0x30] sm:$0xff]   ;;  %v1544_v44 = vld [vmem:[%s1664_s9 + $0x38] sm:$0xff]   ;;  %vm1331_vm8 = vmpackc.low %vm1380_vm6, %vm1582_vm3 }
  0x1b   : > { %1465 = vmatprep.subr.bf16.mxu1 %v1530_v14  ;;  %vm1323_vm10 = vmpackc.low %vm1582_vm3, %vm1378_vm9 }
  0x1c   : > { %1390 = vmatpush3.bf16.msra.mxu0 %v1529_v13 }
  0x1d   : > { %1391 = vmatprep.subr.bf16.mxu0 %v1531_v15 }
  0x1e   : > { %1466 = vmatpush3.bf16.msra.mxu1 %v1530_v14 }
  0x1f   : > { %1467 = vmatprep.subr.bf16.mxu1 %v1533_v18 }
  0x20   : > { %1392 = vmatpush3.bf16.msra.mxu0 %v1532_v17 }
  0x21   : > { %1393 = vmatprep.subr.bf16.mxu0 %v1534_v19 }
  0x22   : > { %1468 = vmatpush3.bf16.msra.mxu1 %v1533_v18 }
  0x23   : > { %1469 = vmatprep.subr.bf16.mxu1 %v1536_v22 }
  0x24   : > { %1394 = vmatpush3.bf16.msra.mxu0 %v1535_v24 }
  0x25   : > { %1395 = vmatprep.subr.bf16.mxu0 %v1537_v26 }
  0x26   : > { %1470 = vmatpush3.bf16.msra.mxu1 %v1536_v22 }
  0x27   : > { %1471 = vmatprep.subr.bf16.mxu1 %v1539_v28 }
  0x28   : > { %1396 = vmatpush3.bf16.msra.mxu0 %v1538_v29 }
  0x29   : > { %1397 = vmatprep.subr.bf16.mxu0 %v1540_v32 }
  0x2a   : > { %1472 = vmatpush3.bf16.msra.mxu1 %v1539_v28 }
  0x2b   : > { %1473 = vmatprep.subr.bf16.mxu1 %v1542_v34 }
  0x2c   : > { %1398 = vmatpush3.bf16.msra.mxu0 %v1541_v37 }
  0x2d   : > { %1399 = vmatprep.subr.bf16.mxu0 %v1543_v39 }
  0x2e   : > { %1474 = vmatpush3.bf16.msra.mxu1 %v1542_v34 }
  0x2f   : > { %1475 = vmatprep.subr.bf16.mxu1 %v1545_v42 }
  0x30   : > { %1400 = vmatpush3.bf16.msra.mxu0 %v1544_v44 }
  0x32   : > { %1476 = vmatpush3.bf16.msra.mxu1 %v1545_v42 }
  0x33   : > { %1321 = vmatmul.mubr.msk.bf16.vlgmr.msra.gmra.mrb[0].mxu0 %vm1319_vm7, %v1320_v50 }
  0x34   : > { %573 = vmatprep.mubr.bf16.mxu0 %v339_v51 }
  0x35   : > { %1478 = vmatmul.mubr.msk.bf16.vlgmr.msra.gmra.mrb[0].mxu1 %vm1331_vm8, %v1332_v54 }
  0x3b   : > { %1325 = vmatmul.mubr.msk.bf16.gmra.mrb[4].mxu0 %vm1323_vm10, %v1324_v58  ;;  %v679_v58 = vunpack.c.l.s4 %v1587_v57 }
 0x106   : > { %v1401_v59 = vpop.f32.mrb[0].mxu0 }
 0x107   : > { %v1402_v60 = vpop.f32.mrb[1].mxu0 }
 0x108   : > { %v1403_v61 = vadd.f32 %v1402_v60, %v1401_v59  ;;  %v1404_v62 = vpop.f32.mrb[2].mxu0  ;;  %v1479_v63 = vpop.f32.mrb[0].mxu1  ;;  %v680_v59 = vunpack.c.0.s8 %v679_v58 }
 0x109   : > { %v1405_v4 = vpop.f32.mrb[3].mxu0  ;;  %v616_v5 = vpop.f32.mrb[1].mxu1 }
 0x10a   : > { %v1406_v6 = vadd.f32 %v1405_v4, %v1404_v62  ;;  %v1721_v7 = vadd.f32 %v1403_v61, %v616_v5  ;;  %v1480_v8 = vpop.f32.mrb[2].mxu1  ;;  %v683_v60 = vsub.s32 %v680_v59, %v1679_v16  ;;  %v631_v4 = vld [vmem:[%s1654_s29] sm:$0x1]  ;;  %v700_v5 = vsub.s32 0, %v1679_v16 }
 0x10b   : > { %v619_v9 = vpop.f32.mrb[3].mxu1 }
 0x10c   : > { %v1723_v10 = vadd.f32 %v1406_v6, %v619_v9  ;;  %v642_v18 = vmul.f32 %v1721_v7, %v1721_v7  ;;  %v632_v9 = vld [vmem:[%s1659_s6] sm:$0x1] }
 0x10e   : > { %v1407_v11 = vpop.f32.mrb[4].mxu0  ;;  %v643_v13 = vmul.f32 %v1723_v10, %v1723_v10  ;;  %v633_v19 = vadd.f32 %v1723_v10, %v1721_v7 }
 0x10f   : > { %v1408_v12 = vpop.f32.mrb[5].mxu0 }
 0x110   : > { %v1409_v14 = vadd.f32 %v1408_v12, %v1407_v11  ;;  %v1410_v15 = vpop.f32.mrb[6].mxu0  ;;  %v646_v22 = vadd.f32 %v643_v13, %v642_v18 }
 0x111   : > { %v1411_v17 = vpop.f32.mrb[7].mxu0 }
 0x112   : > { %v1731_v20 = vadd.f32 %v1479_v63, %v1409_v14  ;;  %v1412_v21 = vadd.f32 %v1411_v17, %v1410_v15 }
 0x114   : > { %v634_v23 = vadd.f32 %v633_v19, %v1731_v20  ;;  %v644_v24 = vmul.f32 %v1731_v20, %v1731_v20  ;;  %v628_v25 = vadd.f32 %v1480_v8, %v1412_v21 }
 0x116   : > { %v647_v26 = vadd.f32 %v646_v22, %v644_v24  ;;  %v635_v27 = vadd.f32 %v634_v23, %v628_v25  ;;  %v645_v28 = vmul.f32 %v628_v25, %v628_v25 }
 0x118   : > { %v636_v29 = vrot.slane %v635_v27, 4  ;;  %v648_v30 = vadd.f32 %v647_v26, %v645_v28 }
 0x11a   : > { %v637_v31 = vadd.f32 %v636_v29, %v635_v27  ;;  %v649_v32 = vrot.slane %v648_v30, 4 }
 0x11c   : > { %v638_v33 = vrot.slane %v637_v31, 2  ;;  %v650_v34 = vadd.f32 %v649_v32, %v648_v30 }
 0x11e   : > { %v639_v35 = vadd.f32 %v638_v33, %v637_v31  ;;  %v651_v36 = vrot.slane %v650_v34, 2 }
 0x120   : > { %v640_v37 = vrot.slane %v639_v35, 1  ;;  %v652_v38 = vadd.f32 %v651_v36, %v650_v34 }
 0x122   : > { %v653_v39 = vrot.slane %v652_v38, 1  ;;  %v641_v40 = vadd.f32 %v640_v37, %v639_v35 }
 0x124   : > { %v654_v41 = vadd.f32 %v653_v39, %v652_v38 }
 0x126   : > { %v655_v42 = vsel %vm224_vm2, %v641_v40, %v654_v41 }
 0x127   : > { %656 = vrot.lane.b32.xlu0 %v655_v42, %s1583_s10 }
 0x199   : > { %v657_v43 = vpop.permute.xlu0 %656 }
 0x19a   : > { %v658_v44 = vadd.f32 %v657_v43, %v655_v42 }
 0x19c   : > { %659 = vrot.lane.b32.xlu0 %v658_v44, %s1584_s11 }
 0x20e   : > { %v660_v45 = vpop.permute.xlu0 %659 }
 0x20f   : > { %v661_v46 = vadd.f32 %v660_v45, %v658_v44 }
 0x211   : > { %662 = vrot.lane.b32.xlu1 %v661_v46, %s1585_s12 }
 0x283   : > { %v663_v47 = vpop.permute.xlu1 %662 }
 0x284   : > { %v664_v48 = vadd.f32 %v663_v47, %v661_v46 }
 0x286   : > { %665 = vrot.lane.b32.xlu1 %v664_v48, %s1586_s13 }
 0x2f8   : > { %v666_v49 = vpop.permute.xlu1 %665 }
 0x2f9   : > { %v667_v50 = vadd.f32 %v666_v49, %v664_v48 }
 0x2fb   : > { %v668_v51 = vmul.f32 0.001953125, %v667_v50 }
 0x2fd   : > { %v669_v52 = vmul.f32 %v668_v51, %v668_v51 }
 0x2ff   : > { %v671_v53 = vrot.slane %v669_v52, 7 }
 0x301   : > { %v673_v54 = vsub.f32 %v668_v51, %v671_v53 }
 0x303   : > { %v674_v55 = vmax.f32 %v673_v54, 0.0 }
 0x305   : > { %v675_v56 = vadd.f32 1e-05, %v674_v55 }
 0x307   : > { %1546 = vrsqrt.f32 %v675_v56 }
 0x311   : > { %v1547_v61 = vpop.eup %1546 }
 0x312   : > { %v684_v62 = vrot.slane %v1547_v61, %v683_v60 }
 0x314   : > { %v685_v63 = vcombine.high %v684_v62, %v684_v62 }
 0x316   : > { %v692_v6 = vrot.slane %v685_v63, %v683_v60 }
 0x318   : > { %v694_v8 = vmul.f32 %v692_v6, %v631_v4 }
 0x31a   : > { %v695_v11 = vmul.f32 %v694_v8, %v668_v51  ;;  %v701_v12 = vrot.slane %v694_v8, %v700_v5 }
 0x31c   : > { %v696_v13 = vsub.f32 %v632_v9, %v695_v11  ;;  %v703_v14 = vmul.f32 %v701_v12, %v1721_v7  ;;  %v704_v15 = vmul.f32 %v701_v12, %v1723_v10  ;;  %v705_v17 = vmul.f32 %v701_v12, %v1731_v20 }
 0x31d   : > { %v706_v18 = vmul.f32 %v701_v12, %v628_v25 }
 0x31e   : > { %v711_v19 = vrot.slane %v696_v13, %v700_v5 }
 0x320   : > { %v713_v21 = vadd.f32 %v711_v19, %v703_v14  ;;  %v714_v22 = vadd.f32 %v711_v19, %v704_v15  ;;  %v715_v23 = vadd.f32 %v711_v19, %v705_v17  ;;  %v716_v24 = vadd.f32 %v711_v19, %v706_v18 }
 0x322   : > { %v717_v26 = vmax.f32 %v713_v21, 0.0  ;;  %v718_v16 = vmax.f32 %v714_v22, 0.0  ;;  %v719_v27 = vmax.f32 %v715_v23, 0.0  ;;  %v720_v28 = vmax.f32 %v716_v24, 0.0 }
 0x324   : > { %721 = vst [vmem:[#allocation2] sm:$0xff] %v717_v26  ;;  %722 = vst [vmem:[#allocation2 + $0x8] sm:$0xff] %v718_v16 }
 0x325   : > { %723 = vst [vmem:[#allocation2 + $0x10] sm:$0xff] %v719_v27  ;;  %724 = vst [vmem:[#allocation2 + $0x18] sm:$0xff] %v720_v28 }
 0x326 PF: > { %p1334_p5 = scmp.ne.s32.totalorder %s1625_s16, 1 }
 0x327   : > { %v1548_v7 = vld [vmem:[%s1664_s9 + $0x40] sm:$0xff] (!%p1334_p5)   ;;  %v1551_v25 = vld [vmem:[%s1664_s9 + $0x48] sm:$0xff] (!%p1334_p5)   ;;  %v1554_v31 = vld [vmem:[%s1664_s9 + $0x50] sm:$0xff] (!%p1334_p5)   ;;  %v763_v34 = vlaneseq (!%p1334_p5)  ;;  %vm737_vm11 = vcmask (!%p1334_p5), 1040384   ;;  %vm750_vm12 = vcmask (!%p1334_p5), 1046528   ;;  %vm1588_vm15 = vmmov (!%p1334_p5), 1  }
 0x328   : > { %728 = sbr.rel (%p1334_p5) target bundleno = 1597 (0x63d), region = 44  ;;  %v1549_v10 = vld [vmem:[%s1664_s9] sm:$0xff] (!%p1334_p5)   ;;  %1423 = vmatprep.subr.bf16.mxu0 (!%p1334_p5), %v1548_v7  ;;  %v1552_v29 = vld [vmem:[%s1664_s9 + $0x8] sm:$0xff] (!%p1334_p5)   ;;  %v1555_v32 = vld [vmem:[%s1664_s9 + $0x10] sm:$0xff] (!%p1334_p5)   ;;  %s1589_s14 = smov (!%p1334_p5), 8  }
 0x329   : > { %v1550_v20 = vld [vmem:[%s1664_s9 + $0x80] sm:$0xff] (!%p1334_p5)   ;;  %1424 = vmatpush3.bf16.msra.mxu0 (!%p1334_p5), %v1549_v10  ;;  %v1553_v30 = vld [vmem:[%s1664_s9 + $0x88] sm:$0xff] (!%p1334_p5)   ;;  %v1556_v33 = vld [vmem:[%s1664_s9 + $0x90] sm:$0xff] (!%p1334_p5)   ;;  %v1758_v39 = vshrl.u32 (!%p1334_p5), %v763_v34, 7  ;;  %s1590_s16 = smov (!%p1334_p5), 16   ;;  %s1591_s17 = smov (!%p1334_p5), 32  }
 0x32a   : > { %1481 = vmatprep.subr.bf16.mxu1 (!%p1334_p5), %v1550_v20  ;;  %1425 = vmatprep.subr.bf16.mxu0 (!%p1334_p5), %v1551_v25  ;;  %v1557_v35 = vld [vmem:[%s1664_s9 + $0x58] sm:$0xff] (!%p1334_p5)   ;;  %v1560_v38 = vld [vmem:[%s1664_s9 + $0x60] sm:$0xff] (!%p1334_p5)   ;;  %v1563_v42 = vld [vmem:[%s1664_s9 + $0x68] sm:$0xff] (!%p1334_p5)   ;;  %s1592_s18 = smov (!%p1334_p5), 64  }
 0x32b   : > { %1482 = vmatpush3.bf16.msra.mxu1 (!%p1334_p5), %v1550_v20  ;;  %v1558_v36 = vld [vmem:[%s1664_s9 + $0x18] sm:$0xff] (!%p1334_p5)   ;;  %v1562_v40 = vld [vmem:[%s1664_s9 + $0xa0] sm:$0xff] (!%p1334_p5)   ;;  %v765_v43 = vadd.s32 (!%p1334_p5), 8, %v1758_v39  ;;  %v1565_v44 = vld [vmem:[%s1664_s9 + $0xa8] sm:$0xff] (!%p1334_p5)   ;;  %v767_v49 = vadd.s32 (!%p1334_p5), 24, %v1758_v39  ;;  %v772_v54 = vand.u32 (!%p1334_p5), 15, %v1758_v39 }
 0x32c   : > { %1483 = vmatprep.subr.bf16.mxu1 (!%p1334_p5), %v1553_v30  ;;  %v1559_v37 = vld [vmem:[%s1664_s9 + $0x98] sm:$0xff] (!%p1334_p5)   ;;  %v1561_v41 = vld [vmem:[%s1664_s9 + $0x20] sm:$0xff] (!%p1334_p5)   ;;  %v1564_v45 = vld [vmem:[%s1664_s9 + $0x28] sm:$0xff] (!%p1334_p5)   ;;  %v766_v14 = vadd.s32 (!%p1334_p5), 16, %v1758_v39 }
 0x32d   : > { %1426 = vmatpush3.bf16.msra.mxu0 (!%p1334_p5), %v1552_v29  ;;  %v1566_v46 = vld [vmem:[%s1664_s9 + $0x70] sm:$0xff] (!%p1334_p5)   ;;  %v779_v47 = vand.u32 (!%p1334_p5), 15, %v765_v43  ;;  %v1569_v51 = vld [vmem:[%s1664_s9 + $0x78] sm:$0xff] (!%p1334_p5)   ;;  %v729_v52 = vld [vmem:[#allocation2] sm:$0xff] (!%p1334_p5)  ;;  %v793_v6 = vand.u32 (!%p1334_p5), 15, %v767_v49  ;;  %vm1381_vm14 = vcmp.ne.s32.totalorder (!%p1334_p5), %v772_v54, 0 }
 0x32e   : > { %1427 = vmatprep.subr.bf16.mxu0 (!%p1334_p5), %v1554_v31  ;;  %v1568_v48 = vld [vmem:[%s1664_s9 + $0xb0] sm:$0xff] (!%p1334_p5)   ;;  %v730_v53 = vld [vmem:[#allocation2 + $0x8] sm:$0xff] (!%p1334_p5)  ;;  %v738_v56 = vrot.slane (!%p1334_p5), %v729_v52, 7  ;;  %v751_v58 = vrot.slane (!%p1334_p5), %v729_v52, 1  ;;  %v732_v61 = vld [vmem:[#allocation2 + $0x18] sm:$0xff] (!%p1334_p5)  ;;  %v786_v26 = vand.u32 (!%p1334_p5), 15, %v766_v14 }
 0x32f   : > { %1484 = vmatpush3.bf16.msra.mxu1 %v1553_v30  ;;  %v1567_v50 = vld [vmem:[%s1664_s9 + $0x30] sm:$0xff]   ;;  %vm1772_vm13 = vcmp.ne.s32.totalorder %v779_v47, 15  ;;  %v739_v57 = vrot.slane %v730_v53, 7  ;;  %v752_v59 = vrot.slane %v730_v53, 1  ;;  %v1571_v62 = vld [vmem:[%s1664_s9 + $0xb8] sm:$0xff]   ;;  %v849_v63 = vpack.c.bf16 %v730_v53, %v729_v52  ;;  %vm1360_vm2 = vmpackc.low %vm1588_vm15, %vm1381_vm14 }
 0x330   : > { %1485 = vmatprep.subr.bf16.mxu1 %v1556_v33  ;;  %v731_v60 = vld [vmem:[#allocation2 + $0x10] sm:$0xff]  ;;  %v756_v5 = vrot.slane %v732_v61, 1  ;;  %v1570_v8 = vld [vmem:[%s1664_s9 + $0x38] sm:$0xff]   ;;  %v749_v9 = vsel %vm737_vm11, 0.0, %v738_v56  ;;  %vm1368_vm0 = vmpackc.low %vm1772_vm13, %vm1588_vm15  ;;  %vm1384_vm1 = vcmp.ne.s32.totalorder %v793_v6, 15  ;;  %v743_v23 = vrot.slane %v732_v61, 7 }
 0x331   : > { %1428 = vmatpush3.bf16.msra.mxu0 %v1555_v32  ;;  %v754_v4 = vrot.slane %v731_v60, 1  ;;  %v740_v11 = vsel %vm737_vm11, %v738_v56, %v739_v57  ;;  %v753_v12 = vsel %vm750_vm12, %v751_v58, %v752_v59  ;;  %1078 = vmatprep.mubr.bf16.mxu0 %v849_v63  ;;  %v741_v21 = vrot.slane %v731_v60, 7  ;;  %vm1372_vm3 = vmpackc.low %vm1384_vm1, %vm1588_vm15 }
 0x332   : > { %1429 = vmatprep.subr.bf16.mxu0 %v1557_v35  ;;  %v762_v18 = vsel %vm750_vm12, %v756_v5, 0.0  ;;  %v1361_v19 = vpack.c.bf16 %v740_v11, %v749_v9  ;;  %v852_v22 = vpack.c.bf16 %v732_v61, %v731_v60  ;;  %vm1382_vm4 = vcmp.ne.s32.totalorder %v786_v26, 0 }
 0x333   : > { %1486 = vmatpush3.bf16.msra.mxu1 %v1556_v33  ;;  %v755_v13 = vsel %vm750_vm12, %v752_v59, %v754_v4  ;;  %v757_v17 = vsel %vm750_vm12, %v754_v4, %v756_v5  ;;  %v742_v16 = vsel %vm737_vm11, %v739_v57, %v741_v21  ;;  %v744_v27 = vsel %vm737_vm11, %v741_v21, %v743_v23  ;;  %vm1364_vm5 = vmpackc.low %vm1588_vm15, %vm1382_vm4 }
 0x334   : > { %1487 = vmatprep.subr.bf16.mxu1 %v1559_v37  ;;  %v1369_v15 = vpack.c.bf16 %v755_v13, %v753_v12  ;;  %v1373_v24 = vpack.c.bf16 %v762_v18, %v757_v17  ;;  %v1365_v28 = vpack.c.bf16 %v744_v27, %v742_v16  ;;  %v1593_v27 = vmov 1966171168  }
 0x335   : > { %1430 = vmatpush3.bf16.msra.mxu0 %v1558_v36 }
 0x336   : > { %1431 = vmatprep.subr.bf16.mxu0 %v1560_v38  ;;  %1497 = vmatprep.mubr.msk.bf16.mxu1 %vm1368_vm0, %v1369_v15 }
 0x337   : > { %1488 = vmatpush3.bf16.msra.mxu1 %v1559_v37 }
 0x338   : > { %1489 = vmatprep.subr.bf16.mxu1 %v1562_v40 }
 0x339   : > { %1432 = vmatpush3.bf16.msra.mxu0 %v1561_v41 }
 0x33a   : > { %1433 = vmatprep.subr.bf16.mxu0 %v1563_v42 }
 0x33b   : > { %1490 = vmatpush3.bf16.msra.mxu1 %v1562_v40 }
 0x33c   : > { %1491 = vmatprep.subr.bf16.mxu1 %v1565_v44 }
 0x33d   : > { %1434 = vmatpush3.bf16.msra.mxu0 %v1564_v45 }
 0x33e   : > { %1435 = vmatprep.subr.bf16.mxu0 %v1566_v46 }
 0x33f   : > { %1492 = vmatpush3.bf16.msra.mxu1 %v1565_v44 }
 0x340   : > { %1493 = vmatprep.subr.bf16.mxu1 %v1568_v48 }
 0x341   : > { %1436 = vmatpush3.bf16.msra.mxu0 %v1567_v50 }
 0x342   : > { %1437 = vmatprep.subr.bf16.mxu0 %v1569_v51 }
 0x343   : > { %1494 = vmatpush3.bf16.msra.mxu1 %v1568_v48 }
 0x344   : > { %1495 = vmatprep.subr.bf16.mxu1 %v1571_v62 }
 0x345   : > { %1438 = vmatpush3.bf16.msra.mxu0 %v1570_v8 }
 0x347   : > { %1496 = vmatpush3.bf16.msra.mxu1 %v1571_v62 }
 0x348   : > { %1362 = vmatmul.mubr.msk.bf16.vlgmr.msra.gmra.mrb[0].mxu0 %vm1360_vm2, %v1361_v19 }
 0x349   : > { %1086 = vmatprep.mubr.bf16.mxu0 %v852_v22 }
 0x34a   : > { %1498 = vmatmul.mubr.msk.bf16.vlgmr.msra.gmra.mrb[0].mxu1 %vm1372_vm3, %v1373_v24 }
 0x350   : > { %1366 = vmatmul.mubr.msk.bf16.gmra.mrb[4].mxu0 %vm1364_vm5, %v1365_v28  ;;  %v1192_v28 = vunpack.c.l.s4 %v1593_v27 }
 0x41b   : > { %v1439_v7 = vpop.f32.mrb[0].mxu0 }
 0x41c   : > { %v1440_v10 = vpop.f32.mrb[1].mxu0 }
 0x41d   : > { %v1441_v20 = vadd.f32 %v1440_v10, %v1439_v7  ;;  %v1442_v25 = vpop.f32.mrb[2].mxu0  ;;  %v1499_v29 = vpop.f32.mrb[0].mxu1  ;;  %v1193_v7 = vunpack.c.0.s8 %v1192_v28 }
 0x41e   : > { %v1443_v30 = vpop.f32.mrb[3].mxu0  ;;  %v1129_v31 = vpop.f32.mrb[1].mxu1 }
 0x41f   : > { %v1444_v32 = vadd.f32 %v1443_v30, %v1442_v25  ;;  %v1793_v33 = vadd.f32 %v1441_v20, %v1129_v31  ;;  %v1500_v34 = vpop.f32.mrb[2].mxu1  ;;  %v1196_v10 = vsub.s32 %v1193_v7, %v1758_v39  ;;  %v1144_v30 = vld [vmem:[%s1654_s29] sm:$0x1] }
 0x420   : > { %v1132_v35 = vpop.f32.mrb[3].mxu1 }
 0x421   : > { %v1795_v36 = vadd.f32 %v1444_v32, %v1132_v35  ;;  %v1155_v44 = vmul.f32 %v1793_v33, %v1793_v33  ;;  %v1213_v32 = vsub.s32 0, %v1758_v39  ;;  %v1145_v35 = vld [vmem:[%s1659_s6] sm:$0x1] }
 0x423   : > { %v1445_v37 = vpop.f32.mrb[4].mxu0  ;;  %v1156_v40 = vmul.f32 %v1795_v36, %v1795_v36  ;;  %v1146_v45 = vadd.f32 %v1795_v36, %v1793_v33 }
 0x424   : > { %v1446_v38 = vpop.f32.mrb[5].mxu0 }
 0x425   : > { %v1447_v41 = vadd.f32 %v1446_v38, %v1445_v37  ;;  %v1448_v42 = vpop.f32.mrb[6].mxu0  ;;  %v1159_v48 = vadd.f32 %v1156_v40, %v1155_v44 }
 0x426   : > { %v1449_v43 = vpop.f32.mrb[7].mxu0 }
 0x427   : > { %v1803_v46 = vadd.f32 %v1499_v29, %v1447_v41  ;;  %v1450_v47 = vadd.f32 %v1449_v43, %v1448_v42 }
 0x429   : > { %v1147_v49 = vadd.f32 %v1146_v45, %v1803_v46  ;;  %v1157_v50 = vmul.f32 %v1803_v46, %v1803_v46  ;;  %v1141_v51 = vadd.f32 %v1500_v34, %v1450_v47 }
 0x42b   : > { %v1160_v52 = vadd.f32 %v1159_v48, %v1157_v50  ;;  %v1148_v53 = vadd.f32 %v1147_v49, %v1141_v51  ;;  %v1158_v54 = vmul.f32 %v1141_v51, %v1141_v51 }
 0x42d   : > { %v1149_v55 = vrot.slane %v1148_v53, 4  ;;  %v1161_v56 = vadd.f32 %v1160_v52, %v1158_v54 }
 0x42f   : > { %v1150_v57 = vadd.f32 %v1149_v55, %v1148_v53  ;;  %v1162_v58 = vrot.slane %v1161_v56, 4 }
 0x431   : > { %v1151_v59 = vrot.slane %v1150_v57, 2  ;;  %v1163_v60 = vadd.f32 %v1162_v58, %v1161_v56 }
 0x433   : > { %v1152_v61 = vadd.f32 %v1151_v59, %v1150_v57  ;;  %v1164_v62 = vrot.slane %v1163_v60, 2 }
 0x435   : > { %v1153_v63 = vrot.slane %v1152_v61, 1  ;;  %v1165_v4 = vadd.f32 %v1164_v62, %v1163_v60 }
 0x437   : > { %v1166_v5 = vrot.slane %v1165_v4, 1  ;;  %v1154_v6 = vadd.f32 %v1153_v63, %v1152_v61 }
 0x439   : > { %v1167_v8 = vadd.f32 %v1166_v5, %v1165_v4 }
 0x43b   : > { %v1168_v9 = vsel %vm737_vm11, %v1154_v6, %v1167_v8 }
 0x43c   : > { %1169 = vrot.lane.b32.xlu0 %v1168_v9, %s1589_s14 }
 0x4ae   : > { %v1170_v11 = vpop.permute.xlu0 %1169 }
 0x4af   : > { %v1171_v12 = vadd.f32 %v1170_v11, %v1168_v9 }
 0x4b1   : > { %1172 = vrot.lane.b32.xlu0 %v1171_v12, %s1590_s16 }
 0x523   : > { %v1173_v13 = vpop.permute.xlu0 %1172 }
 0x524   : > { %v1174_v14 = vadd.f32 %v1173_v13, %v1171_v12 }
 0x526   : > { %1175 = vrot.lane.b32.xlu1 %v1174_v14, %s1591_s17 }
 0x598   : > { %v1176_v15 = vpop.permute.xlu1 %1175 }
 0x599   : > { %v1177_v17 = vadd.f32 %v1176_v15, %v1174_v14 }
 0x59b   : > { %1178 = vrot.lane.b32.xlu1 %v1177_v17, %s1592_s18 }
 0x60d   : > { %v1179_v18 = vpop.permute.xlu1 %1178 }
 0x60e   : > { %v1180_v19 = vadd.f32 %v1179_v18, %v1177_v17 }
 0x610   : > { %v1181_v21 = vmul.f32 0.001953125, %v1180_v19 }
 0x612   : > { %v1182_v22 = vmul.f32 %v1181_v21, %v1181_v21 }
 0x614   : > { %v1184_v23 = vrot.slane %v1182_v22, 7 }
 0x616   : > { %v1186_v24 = vsub.f32 %v1181_v21, %v1184_v23 }
 0x618   : > { %v1187_v26 = vmax.f32 %v1186_v24, 0.0 }
 0x61a   : > { %v1188_v16 = vadd.f32 1e-05, %v1187_v26 }
 0x61c   : > { %1572 = vrsqrt.f32 %v1188_v16 }
 0x626   : > { %v1573_v20 = vpop.eup %1572 }
 0x627   : > { %v1197_v25 = vrot.slane %v1573_v20, %v1196_v10 }
 0x629   : > { %v1198_v29 = vcombine.high %v1197_v25, %v1197_v25 }
 0x62b   : > { %v1205_v31 = vrot.slane %v1198_v29, %v1196_v10 }
 0x62d   : > { %v1207_v34 = vmul.f32 %v1205_v31, %v1144_v30 }
 0x62f   : > { %v1208_v37 = vmul.f32 %v1207_v34, %v1181_v21  ;;  %v1214_v38 = vrot.slane %v1207_v34, %v1213_v32 }
 0x631   : > { %v1209_v40 = vsub.f32 %v1145_v35, %v1208_v37  ;;  %v1216_v42 = vmul.f32 %v1214_v38, %v1793_v33  ;;  %v1217_v43 = vmul.f32 %v1214_v38, %v1795_v36  ;;  %v1218_v44 = vmul.f32 %v1214_v38, %v1803_v46 }
 0x632   : > { %v1219_v45 = vmul.f32 %v1214_v38, %v1141_v51 }
 0x633   : > { %v1224_v41 = vrot.slane %v1209_v40, %v1213_v32 }
 0x635   : > { %v1226_v47 = vadd.f32 %v1224_v41, %v1633_v0  ;;  %v1227_v48 = vadd.f32 %v1224_v41, %v1638_v1  ;;  %v1228_v49 = vadd.f32 %v1224_v41, %v1643_v2  ;;  %v1229_v39 = vadd.f32 %v1224_v41, %v1648_v3 }
 0x637   : > { %v1230_v50 = vadd.f32 %v1226_v47, %v1216_v42  ;;  %v1231_v52 = vadd.f32 %v1227_v48, %v1217_v43  ;;  %v1232_v53 = vadd.f32 %v1228_v49, %v1218_v44  ;;  %v1233_v54 = vadd.f32 %v1229_v39, %v1219_v45 }
 0x639   : > { %v1234_v55 = vmax.f32 %v1230_v50, 0.0  ;;  %v1235_v56 = vmax.f32 %v1231_v52, 0.0  ;;  %v1236_v33 = vmax.f32 %v1232_v53, 0.0  ;;  %v1237_v57 = vmax.f32 %v1233_v54, 0.0 }
 0x63b   : > { %1238 = vst [vmem:[%s1839_s4] sm:$0xff] %v1234_v55  ;;  %1239 = vst [vmem:[%s1839_s4 + $0x8] sm:$0xff] %v1235_v56 }
 0x63c   : > { %1240 = vst [vmem:[%s1839_s4 + $0x10] sm:$0xff] %v1236_v33  ;;  %1241 = vst [vmem:[%s1839_s4 + $0x18] sm:$0xff] %v1237_v57 }
 0x63d PF: > { %s14_s15 = sadd.s32 1, %s1580_s15  }
 0x63e   : > { %p11_p6 = scmp.ge.s32.totalorder %s14_s15, 4  }
 0x640   :  { %13 = sbr.rel (!%p11_p6) target bundleno = 1 (0x1), region = 76 }

</bundles_post_ra>
